<compile_context>
chip_gen: v7x
topology: tpu7x:2x2x1
jax: 0.10.0
libtpu: 0.0.40
codegen_flags: <defaults>
</compile_context>

<pallas_src>
import functools

import jax
import jax.numpy as jnp
from jax import lax
from jax.experimental import pallas as pl
from jax.experimental.pallas import tpu as pltpu


# ----------------------------- Pallas kernel ------------------------------ #
def _fused_kernel(*refs, apply_relu: bool, res_mode: str):
    """out = [relu]( (x @ w) * scale + bias [+ residual | + xs @ wsc] )."""
    if res_mode == "proj":
        x_ref, w_ref, sb_ref, xs_ref, ws_ref, o_ref = refs
    elif res_mode == "add":
        x_ref, w_ref, sb_ref, res_ref, o_ref = refs
    else:
        x_ref, w_ref, sb_ref, o_ref = refs

    acc = jnp.dot(x_ref[...], w_ref[...], preferred_element_type=jnp.float32)
    sb = sb_ref[...]                               # (2, Np) f32
    out = acc * sb[0:1, :] + sb[1:2, :]            # folded BN affine (f32)
    if res_mode == "add":
        out = out + res_ref[...].astype(jnp.float32)
    elif res_mode == "proj":
        # fused 1x1 projection shortcut (BN scale pre-folded into ws,
        # BN bias pre-folded into `bias` above).
        out = out + jnp.dot(xs_ref[...], ws_ref[...],
                            preferred_element_type=jnp.float32)
    if apply_relu:
        out = jnp.maximum(out, 0.0)
    o_ref[...] = out.astype(o_ref.dtype)


# ------------------------------ helpers ------------------------------------ #
def _round_up(x, m):
    return (x + m - 1) // m * m


def _choose_tm(M):
    """Large M tiles; keep >=2 grid tiles when possible (v7x 2 TensorCores)."""
    if M >= 1024:
        return 512
    if M >= 256:
        return _round_up((M + 1) // 2, 8)
    return max(8, _round_up(M, 8))


def fused_conv_bn(x2d, w2d, scale, bias, *, apply_relu, out_dtype,
                  residual=None, proj=None):
    """Fused (im2col-matmul + folded-BN [+ residual / fused 1x1 shortcut] [+ ReLU]).

    x2d:  (M, K)        activations (any float dtype; cast to bf16)
    w2d:  (K, Nc)       weights
    scale, bias: (Nc,)  folded BN affine
    residual: (M, Nc)   optional tensor added before ReLU
    proj: (xs, ws)      optional fused 1x1 shortcut: xs (M, Cs), ws (Cs, Nc)
                        (BN-scale already folded into ws, BN-bias into `bias`)
    Returns (M, Nc) in out_dtype.
    """
    M, K = x2d.shape
    Nc = w2d.shape[1]
    Np = _round_up(Nc, 128)                        # lane-dense output
    tm = _choose_tm(M)
    Mp = _round_up(M, tm)

    xb = x2d.astype(jnp.bfloat16)
    if Mp != M:
        xb = jnp.pad(xb, ((0, Mp - M), (0, 0)))
    wb = jnp.pad(w2d, ((0, 0), (0, Np - Nc))).astype(jnp.bfloat16)
    sb = jnp.stack(
        [jnp.pad(scale.astype(jnp.float32), (0, Np - Nc)),
         jnp.pad(bias.astype(jnp.float32), (0, Np - Nc))], axis=0)  # (2, Np)

    in_specs = [
        pl.BlockSpec((tm, K), lambda i: (i, 0)),   # activation tile (bf16)
        pl.BlockSpec((K, Np), lambda i: (0, 0)),   # full weight (bf16)
        pl.BlockSpec((2, Np), lambda i: (0, 0)),   # scale/bias (f32)
    ]
    args = [xb, wb, sb]
    out_itemsize = jnp.dtype(out_dtype).itemsize
    extra_bytes = 0

    if residual is not None:
        res_mode = "add"
        rb = jnp.pad(residual.astype(jnp.bfloat16),
                     ((0, Mp - M), (0, Np - Nc)))
        in_specs.append(pl.BlockSpec((tm, Np), lambda i: (i, 0)))
        args.append(rb)
        extra_bytes += 2 * tm * Np * 2
    elif proj is not None:
        res_mode = "proj"
        xs, ws = proj
        Cs = xs.shape[1]
        xsb = jnp.pad(xs.astype(jnp.bfloat16), ((0, Mp - M), (0, 0)))
        wsb = jnp.pad(ws, ((0, 0), (0, Np - Nc))).astype(jnp.bfloat16)
        in_specs.append(pl.BlockSpec((tm, Cs), lambda i: (i, 0)))
        in_specs.append(pl.BlockSpec((Cs, Np), lambda i: (0, 0)))
        args += [xsb, wsb]
        extra_bytes += 2 * (tm * Cs * 2 + Cs * Np * 2)
    else:
        res_mode = "none"

    # Tile footprint estimate (double-buffered) -> explicit scoped-VMEM limit.
    est = (2 * tm * K * 2 + 2 * K * Np * 2 + 2 * 2 * Np * 4
           + 2 * tm * Np * out_itemsize + extra_bytes)
    vmem_limit = int(min(max(est + (4 << 20), 32 << 20), 64 << 20))

    kernel = functools.partial(_fused_kernel, apply_relu=apply_relu,
                               res_mode=res_mode)
    out = pl.pallas_call(
        kernel,
        out_shape=jax.ShapeDtypeStruct((Mp, Np), out_dtype),
        grid=(Mp // tm,),
        in_specs=in_specs,
        out_specs=pl.BlockSpec((tm, Np), lambda i: (i, 0)),
        compiler_params=pltpu.CompilerParams(
            dimension_semantics=("parallel",),
            vmem_limit_bytes=vmem_limit),
    )(*args)
    return out[:M, :Nc]


# ------------------------------ JAX glue ---------------------------------- #
def _im2col_3x3(x_nhwc, stride):
    """im2col for 3x3, padding=1 conv.  Returns (N*Ho*Wo, 9*C) in x's dtype."""
    N, H, W, C = x_nhwc.shape
    xp = jnp.pad(x_nhwc, ((0, 0), (1, 1), (1, 1), (0, 0)))
    Ho = (H + 2 - 3) // stride + 1
    Wo = (W + 2 - 3) // stride + 1
    cols = []
    for ky in range(3):
        for kx in range(3):
            patch = xp[:, ky:ky + stride * (Ho - 1) + 1:stride,
                       kx:kx + stride * (Wo - 1) + 1:stride, :]
            cols.append(patch)
    col = jnp.concatenate(cols, axis=-1)          # (N, Ho, Wo, 9*C)
    return col.reshape(N * Ho * Wo, 9 * C), (N, Ho, Wo)


def _bn_fold(gamma, beta, mean, var, eps=1e-5):
    scale = gamma / jnp.sqrt(var + eps)
    return scale, beta - mean * scale


def basic_block_forward(x_nchw, params, stride):
    """Pallas implementation of BasicBlock.forward (NCHW in / NCHW out, f32)."""
    x = jnp.transpose(x_nchw, (0, 2, 3, 1)).astype(jnp.bfloat16)   # -> NHWC bf16
    N, H, W, Cin = x.shape
    w1 = params["conv1_w"]                        # (planes, Cin, 3, 3)
    planes = w1.shape[0]

    s1, b1 = _bn_fold(params["bn1_g"], params["bn1_b"],
                      params["bn1_m"], params["bn1_v"])
    s2, b2 = _bn_fold(params["bn2_g"], params["bn2_b"],
                      params["bn2_m"], params["bn2_v"])

    # OIHW -> (ky, kx, Cin, Cout) -> (9*Cin, Cout) im2col matmul layout.
    w1_2d = jnp.transpose(w1, (2, 3, 1, 0)).reshape(9 * Cin, planes)
    w2_2d = jnp.transpose(params["conv2_w"], (2, 3, 1, 0)).reshape(
        9 * planes, planes)

    # h1 = relu(bn1(conv1(x)))   (kept as a bf16 intermediate)
    x_col, (Nb, Ho, Wo) = _im2col_3x3(x, stride)
    M = Nb * Ho * Wo
    h1 = fused_conv_bn(x_col, w1_2d, s1, b1, apply_relu=True,
                       out_dtype=jnp.bfloat16)             # (M, planes) bf16

    # out = relu(bn2(conv2(h1)) + shortcut(x)), shortcut fused in-kernel.
    h1_col, _ = _im2col_3x3(h1.reshape(Nb, Ho, Wo, planes), 1)

    if stride != 1 or Cin != planes:
        # 1x1 projection shortcut: fold its BN scale into the 1x1 weights and
        # its BN bias into the conv2 bias, then fuse the matmul into the kernel.
        xs = x[:, ::stride, ::stride, :].reshape(M, Cin)
        wsc = jnp.transpose(params["sc_w"], (2, 3, 1, 0)).reshape(Cin, planes)
        ssc, bsc = _bn_fold(params["sc_bn_g"], params["sc_bn_b"],
                            params["sc_bn_m"], params["sc_bn_v"])
        wsc_scaled = wsc * ssc[None, :]
        out = fused_conv_bn(h1_col, w2_2d, s2, b2 + bsc, apply_relu=True,
                            out_dtype=jnp.float32, proj=(xs, wsc_scaled))
    else:
        res = x.reshape(M, planes)
        out = fused_conv_bn(h1_col, w2_2d, s2, b2, apply_relu=True,
                            out_dtype=jnp.float32, residual=res)

    out = out.reshape(Nb, Ho, Wo, planes)
    return jnp.transpose(out, (0, 3, 1, 2))       # -> NCHW f32


basic_block_forward_jit = jax.jit(basic_block_forward, static_argnums=2)


# --------------------------- pure-JAX reference ---------------------------- #
def _ref_conv(x, w, stride, pad):
    return lax.conv_general_dilated(
        x, w, (stride, stride), [(pad, pad), (pad, pad)],
        dimension_numbers=("NCHW", "OIHW", "NCHW"))


def _ref_bn(x, g, b, m, v, eps=1e-5):
    s = g / jnp.sqrt(v + eps)
    return x * s[None, :, None, None] + (b - m * s)[None, :, None, None]


def basic_block_reference(x, p, stride):
    h = jax.nn.relu(_ref_bn(_ref_conv(x, p["conv1_w"], stride, 1),
                            p["bn1_g"], p["bn1_b"], p["bn1_m"], p["bn1_v"]))
    h2 = _ref_bn(_ref_conv(h, p["conv2_w"], 1, 1),
                 p["bn2_g"], p["bn2_b"], p["bn2_m"], p["bn2_v"])
    cin, planes = x.shape[1], p["conv1_w"].shape[0]
    if stride != 1 or cin != planes:
        sc = _ref_bn(_ref_conv(x, p["sc_w"], stride, 0),
                     p["sc_bn_g"], p["sc_bn_b"], p["sc_bn_m"], p["sc_bn_v"])
    else:
        sc = x
    return jax.nn.relu(h2 + sc)


# ---------------------------- parameter init ------------------------------- #
def init_params(key, in_planes, planes, stride):
    ks = jax.random.split(key, 12)
    p = {
        "conv1_w": jax.random.normal(ks[0], (planes, in_planes, 3, 3),
                                     jnp.float32) * 0.1,
        "bn1_g": jax.random.uniform(ks[1], (planes,), jnp.float32, 0.5, 1.5),
        "bn1_b": jax.random.normal(ks[2], (planes,), jnp.float32) * 0.1,
        "bn1_m": jax.random.normal(ks[3], (planes,), jnp.float32) * 0.1,
        "bn1_v": jax.random.uniform(ks[4], (planes,), jnp.float32, 0.5, 1.5),
        "conv2_w": jax.random.normal(ks[5], (planes, planes, 3, 3),
                                     jnp.float32) * 0.1,
        "bn2_g": jax.random.uniform(ks[6], (planes,), jnp.float32, 0.5, 1.5),
        "bn2_b": jax.random.normal(ks[7], (planes,), jnp.float32) * 0.1,
        "bn2_m": jax.random.normal(ks[8], (planes,), jnp.float32) * 0.1,
        "bn2_v": jax.random.uniform(ks[9], (planes,), jnp.float32, 0.5, 1.5),
    }
    if stride != 1 or in_planes != planes:
        ks2 = jax.random.split(ks[10], 5)
        p.update({
            "sc_w": jax.random.normal(ks2[0], (planes, in_planes, 1, 1),
                                      jnp.float32) * 0.1,
            "sc_bn_g": jax.random.uniform(ks2[1], (planes,), jnp.float32,
                                          0.5, 1.5),
            "sc_bn_b": jax.random.normal(ks2[2], (planes,), jnp.float32) * 0.1,
            "sc_bn_m": jax.random.normal(ks2[3], (planes,), jnp.float32) * 0.1,
            "sc_bn_v": jax.random.uniform(ks2[4], (planes,), jnp.float32,
                                          0.5, 1.5),
        })
    return p


if __name__ == "__main__":
    key = jax.random.PRNGKey(0)
    kx, kp1, kp2 = jax.random.split(key, 3)

    # Case 1: projection shortcut (stride=2, channel expansion 4 -> 8)
    x = jax.random.normal(kx, (2, 4, 16, 16), jnp.float32)
    params_proj = init_params(kp1, in_planes=4, planes=8, stride=2)
    out_proj = jax.block_until_ready(basic_block_forward_jit(x, params_proj, 2))
    ref_proj = basic_block_reference(x, params_proj, 2)
    assert out_proj.shape == (2, 8, 8, 8)
    # bf16 MXU inputs + bf16 intermediates -> looser tolerance vs f32 reference
    assert jnp.allclose(out_proj, ref_proj, rtol=2e-2, atol=2e-2)

    # Case 2: identity shortcut (stride=1, in_planes == planes)
    params_id = init_params(kp2, in_planes=4, planes=4, stride=1)
    out_id = jax.block_until_ready(basic_block_forward_jit(x, params_id, 1))
    ref_id = basic_block_reference(x, params_id, 1)
    assert out_id.shape == (2, 4, 16, 16)
    assert jnp.allclose(out_id, ref_id, rtol=2e-2, atol=2e-2)

    print("KERNEL_OK")
</pallas_src>

<mosaic_0001>
module attributes {stable_mosaic.version = 11 : i64} {
  func.func @_fused_kernel(%arg0: i32, %arg1: memref<128x36xbf16, #tpu.memory_space<vmem>>, %arg2: memref<36x128xbf16, #tpu.memory_space<vmem>>, %arg3: memref<2x128xf32, #tpu.memory_space<vmem>>, %arg4: memref<128x128xbf16, #tpu.memory_space<vmem>>) attributes {dimension_semantics = [#tpu.dimension_semantics<parallel>], iteration_bounds = array<i64: 1>, scalar_prefetch = 0 : i64, scratch_operands = 0 : i64, tpu.core_type = #tpu.core_type<tc>, window_params = [{transform_indices = @transform_0, window_bounds = array<i64: 128, 36>}, {pipeline_mode = #tpu.pipeline_mode<synchronous>, transform_indices = @transform_1, window_bounds = array<i64: 36, 128>}, {pipeline_mode = #tpu.pipeline_mode<synchronous>, transform_indices = @transform_2, window_bounds = array<i64: 2, 128>}, {transform_indices = @transform_3, window_bounds = array<i64: 128, 128>}]} {
    %c0 = arith.constant 0 : index
    %c0_0 = arith.constant 0 : index
    %0 = vector.load %arg1[%c0, %c0_0] : memref<128x36xbf16, #tpu.memory_space<vmem>>, vector<128x36xbf16>
    %c0_1 = arith.constant 0 : index
    %c0_2 = arith.constant 0 : index
    %1 = vector.load %arg2[%c0_1, %c0_2] : memref<36x128xbf16, #tpu.memory_space<vmem>>, vector<36x128xbf16>
    %cst = arith.constant dense<0.000000e+00> : vector<128x128xf32>
    %2 = tpu.matmul %0, %1, %cst {dimension_numbers = #tpu.dot_dimension_numbers<[1], [0], [0], [1], [0, 0, 1, 1], [], []>} : vector<128x36xbf16>, vector<36x128xbf16>, vector<128x128xf32> -> vector<128x128xf32>
    %c0_3 = arith.constant 0 : index
    %c0_4 = arith.constant 0 : index
    %3 = vector.load %arg3[%c0_3, %c0_4] : memref<2x128xf32, #tpu.memory_space<vmem>>, vector<2x128xf32>
    %4 = vector.extract_strided_slice %3 {offsets = [0, 0], sizes = [1, 128], strides = [1, 1]} : vector<2x128xf32> to vector<1x128xf32>
    %5 = vector.broadcast %4 : vector<1x128xf32> to vector<128x128xf32>
    %6 = arith.mulf %2, %5 : vector<128x128xf32>
    %7 = vector.extract_strided_slice %3 {offsets = [1, 0], sizes = [1, 128], strides = [1, 1]} : vector<2x128xf32> to vector<1x128xf32>
    %8 = vector.broadcast %7 : vector<1x128xf32> to vector<128x128xf32>
    %9 = arith.addf %6, %8 : vector<128x128xf32>
    %cst_5 = arith.constant 0.000000e+00 : f32
    %10 = vector.broadcast %cst_5 : f32 to vector<128x128xf32>
    %11 = arith.maximumf %9, %10 : vector<128x128xf32>
    %12 = arith.truncf %11 : vector<128x128xf32> to vector<128x128xbf16>
    %c0_6 = arith.constant 0 : index
    %c0_7 = arith.constant 0 : index
    %13 = vector.load %arg4[%c0_6, %c0_7] : memref<128x128xbf16, #tpu.memory_space<vmem>>, vector<128x128xbf16>
    tpu.vector_store %arg4[%c0_6, %c0_7], %12 {strides = array<i32>} : memref<128x128xbf16, #tpu.memory_space<vmem>>, vector<128x128xbf16>,
    return
  }
  func.func @transform_0(%arg0: i32) -> (i32, i32) {
    %c0_i32 = arith.constant 0 : i32
    %c0_i32_0 = arith.constant 0 : i32
    return %arg0, %c0_i32 : i32, i32
  }
  func.func @transform_1(%arg0: i32) -> (i32, i32) {
    %c0_i32 = arith.constant 0 : i32
    %c0_i32_0 = arith.constant 0 : i32
    %c0_i32_1 = arith.constant 0 : i32
    return %c0_i32, %c0_i32_0 : i32, i32
  }
  func.func @transform_2(%arg0: i32) -> (i32, i32) {
    %c0_i32 = arith.constant 0 : i32
    %c0_i32_0 = arith.constant 0 : i32
    %c0_i32_1 = arith.constant 0 : i32
    return %c0_i32, %c0_i32_0 : i32, i32
  }
  func.func @transform_3(%arg0: i32) -> (i32, i32) {
    %c0_i32 = arith.constant 0 : i32
    %c0_i32_0 = arith.constant 0 : i32
    return %arg0, %c0_i32 : i32, i32
  }
}

module attributes {stable_mosaic.version = 11 : i64} {
  func.func @_fused_kernel(%arg0: i32, %arg1: memref<128x72xbf16, #tpu.memory_space<vmem>>, %arg2: memref<72x128xbf16, #tpu.memory_space<vmem>>, %arg3: memref<2x128xf32, #tpu.memory_space<vmem>>, %arg4: memref<128x4xbf16, #tpu.memory_space<vmem>>, %arg5: memref<4x128xbf16, #tpu.memory_space<vmem>>, %arg6: memref<128x128xf32, #tpu.memory_space<vmem>>) attributes {dimension_semantics = [#tpu.dimension_semantics<parallel>], iteration_bounds = array<i64: 1>, scalar_prefetch = 0 : i64, scratch_operands = 0 : i64, tpu.core_type = #tpu.core_type<tc>, window_params = [{transform_indices = @transform_0, window_bounds = array<i64: 128, 72>}, {pipeline_mode = #tpu.pipeline_mode<synchronous>, transform_indices = @transform_1, window_bounds = array<i64: 72, 128>}, {pipeline_mode = #tpu.pipeline_mode<synchronous>, transform_indices = @transform_2, window_bounds = array<i64: 2, 128>}, {transform_indices = @transform_3, window_bounds = array<i64: 128, 4>}, {pipeline_mode = #tpu.pipeline_mode<synchronous>, transform_indices = @transform_4, window_bounds = array<i64: 4, 128>}, {transform_indices = @transform_5, window_bounds = array<i64: 128, 128>}]} {
    %c0 = arith.constant 0 : index
    %c0_0 = arith.constant 0 : index
    %0 = vector.load %arg1[%c0, %c0_0] : memref<128x72xbf16, #tpu.memory_space<vmem>>, vector<128x72xbf16>
    %c0_1 = arith.constant 0 : index
    %c0_2 = arith.constant 0 : index
    %1 = vector.load %arg2[%c0_1, %c0_2] : memref<72x128xbf16, #tpu.memory_space<vmem>>, vector<72x128xbf16>
    %cst = arith.constant dense<0.000000e+00> : vector<128x128xf32>
    %2 = tpu.matmul %0, %1, %cst {dimension_numbers = #tpu.dot_dimension_numbers<[1], [0], [0], [1], [0, 0, 1, 1], [], []>} : vector<128x72xbf16>, vector<72x128xbf16>, vector<128x128xf32> -> vector<128x128xf32>
    %c0_3 = arith.constant 0 : index
    %c0_4 = arith.constant 0 : index
    %3 = vector.load %arg3[%c0_3, %c0_4] : memref<2x128xf32, #tpu.memory_space<vmem>>, vector<2x128xf32>
    %4 = vector.extract_strided_slice %3 {offsets = [0, 0], sizes = [1, 128], strides = [1, 1]} : vector<2x128xf32> to vector<1x128xf32>
    %5 = vector.broadcast %4 : vector<1x128xf32> to vector<128x128xf32>
    %6 = arith.mulf %2, %5 : vector<128x128xf32>
    %7 = vector.extract_strided_slice %3 {offsets = [1, 0], sizes = [1, 128], strides = [1, 1]} : vector<2x128xf32> to vector<1x128xf32>
    %8 = vector.broadcast %7 : vector<1x128xf32> to vector<128x128xf32>
    %9 = arith.addf %6, %8 : vector<128x128xf32>
    %c0_5 = arith.constant 0 : index
    %c0_6 = arith.constant 0 : index
    %10 = vector.load %arg4[%c0_5, %c0_6] : memref<128x4xbf16, #tpu.memory_space<vmem>>, vector<128x4xbf16>
    %c0_7 = arith.constant 0 : index
    %c0_8 = arith.constant 0 : index
    %11 = vector.load %arg5[%c0_7, %c0_8] : memref<4x128xbf16, #tpu.memory_space<vmem>>, vector<4x128xbf16>
    %cst_9 = arith.constant dense<0.000000e+00> : vector<128x128xf32>
    %12 = tpu.matmul %10, %11, %cst_9 {dimension_numbers = #tpu.dot_dimension_numbers<[1], [0], [0], [1], [0, 0, 1, 1], [], []>} : vector<128x4xbf16>, vector<4x128xbf16>, vector<128x128xf32> -> vector<128x128xf32>
    %13 = arith.addf %9, %12 : vector<128x128xf32>
    %cst_10 = arith.constant 0.000000e+00 : f32
    %14 = vector.broadcast %cst_10 : f32 to vector<128x128xf32>
    %15 = arith.maximumf %13, %14 : vector<128x128xf32>
    %c0_11 = arith.constant 0 : index
    %c0_12 = arith.constant 0 : index
    %16 = vector.load %arg6[%c0_11, %c0_12] : memref<128x128xf32, #tpu.memory_space<vmem>>, vector<128x128xf32>
    tpu.vector_store %arg6[%c0_11, %c0_12], %15 {strides = array<i32>} : memref<128x128xf32, #tpu.memory_space<vmem>>, vector<128x128xf32>,
    return
  }
  func.func @transform_0(%arg0: i32) -> (i32, i32) {
    %c0_i32 = arith.constant 0 : i32
    %c0_i32_0 = arith.constant 0 : i32
    return %arg0, %c0_i32 : i32, i32
  }
  func.func @transform_1(%arg0: i32) -> (i32, i32) {
    %c0_i32 = arith.constant 0 : i32
    %c0_i32_0 = arith.constant 0 : i32
    %c0_i32_1 = arith.constant 0 : i32
    return %c0_i32, %c0_i32_0 : i32, i32
  }
  func.func @transform_2(%arg0: i32) -> (i32, i32) {
    %c0_i32 = arith.constant 0 : i32
    %c0_i32_0 = arith.constant 0 : i32
    %c0_i32_1 = arith.constant 0 : i32
    return %c0_i32, %c0_i32_0 : i32, i32
  }
  func.func @transform_3(%arg0: i32) -> (i32, i32) {
    %c0_i32 = arith.constant 0 : i32
    %c0_i32_0 = arith.constant 0 : i32
    return %arg0, %c0_i32 : i32, i32
  }
  func.func @transform_4(%arg0: i32) -> (i32, i32) {
    %c0_i32 = arith.constant 0 : i32
    %c0_i32_0 = arith.constant 0 : i32
    %c0_i32_1 = arith.constant 0 : i32
    return %c0_i32, %c0_i32_0 : i32, i32
  }
  func.func @transform_5(%arg0: i32) -> (i32, i32) {
    %c0_i32 = arith.constant 0 : i32
    %c0_i32_0 = arith.constant 0 : i32
    return %arg0, %c0_i32 : i32, i32
  }
}

</mosaic_0001>

<bundles_post_ra>
// kernel: basic_block_forward.2
= control target key start
LH: loop header
LB: loop body
LE: loop exit
PB: predicated region body
PF: predicated region fallthrough
CT: control target
= control target key end

     0   :  { %vm91_vm0 = vcmask 293888   ;;  %vm116_vm1 = vcmask 1041408   ;;  %v218_v12 = vlaneseq  ;;  %s614_s1 = inlined_call_operand.vmem [shape: bf16[36,128], index: 1, kind: input, shape index: {}]   ;;  %s615_s0 = inlined_call_operand.vmem [shape: bf16[128,36], index: 0, kind: input, shape index: {}]   ;;  %s616_s2 = inlined_call_operand.vmem [shape: f32[2,128], index: 2, kind: input, shape index: {}]   ;;  %s617_s3 = inlined_call_operand.vmem [shape: bf16[128,128], index: 3, kind: output, shape index: {}]  }
   0x1   :  { %v497_v0 = vld [vmem:[%s614_s1] sm:$0xff]   ;;  %v498_v1 = vld [vmem:[%s614_s1 + $0x8] sm:$0xff]   ;;  %v499_v2 = vld [vmem:[%s614_s1 + $0x10] ss:$0 sps:$4 sm:$0x33]  }
   0x2   :  { %467 = vmatprep.subr.bf16.mxu0 %v497_v0  ;;  %489 = vmatprep.subr.bf16.mxu1 %v497_v0  ;;  %v500_v3 = vld [vmem:[%s615_s0] sm:$0xff]   ;;  %v118_v5 = vsel %vm116_vm1, %v499_v2, 0  ;;  %v502_v6 = vld [vmem:[%s615_s0 + $0x8] sm:$0xff]   ;;  %v504_v8 = vld [vmem:[%s615_s0 + $0x10] sm:$0xff]   ;;  %v219_v13 = vshrl.u32 %v218_v12, 7 }
   0x3   :  { %468 = vmatpush3.bf16.msra.mxu0 %v497_v0  ;;  %492 = vmatpush3.bf16.msra.mxu1 %v497_v0  ;;  %v501_v4 = vld [vmem:[%s615_s0 + $0x20] sm:$0xff]   ;;  %v503_v7 = vld [vmem:[%s615_s0 + $0x28] sm:$0xff]   ;;  %v505_v9 = vld [vmem:[%s615_s0 + $0x30] sm:$0xff]  }
   0x4   :  { %469 = vmatprep.subr.bf16.mxu0 %v498_v1  ;;  %490 = vmatprep.subr.bf16.mxu1 %v498_v1  ;;  %v506_v10 = vld [vmem:[%s615_s0 + $0x18] sm:$0xff]   ;;  %v220_v14 = vsub.s32 0, %v219_v13  ;;  %v217_v15 = vld [vmem:[%s616_s2] sm:$0x3]  ;;  %v240_v16 = vsub.s32 1, %v219_v13 }
   0x5   :  { %473 = vmatprep.mubr.msk.bf16.mxu0 %vm91_vm0, %v500_v3  ;;  %481 = vmatprep.mubr.msk.bf16.mxu1 %vm91_vm0, %v501_v4  ;;  %v507_v11 = vld [vmem:[%s615_s0 + $0x38] sm:$0xff]  }
   0x6   :  { %v221_v17 = vrot.slane %v217_v15, %v220_v14  ;;  %v572_v18 = vrot.slane %v217_v15, %v240_v16 }
   0x7   :  { %470 = vmatpush3.bf16.msra.mxu0 %v498_v1  ;;  %493 = vmatpush3.bf16.msra.mxu1 %v498_v1 }
   0x8   :  { %495 = vmatprep.subr.msk.bf16.mxu0 %vm116_vm1, %v499_v2  ;;  %496 = vmatprep.subr.msk.bf16.mxu1 %vm116_vm1, %v499_v2 }
   0xb   :  { %472 = vmatpush3.bf16.msra.mxu0 %v118_v5  ;;  %494 = vmatpush3.bf16.msra.mxu1 %v118_v5 }
   0xe   :  { %474 = vmatmul.mubr.msk.bf16.vlgmr.msra.gmra.mrb[0].mxu0 %vm91_vm0, %v502_v6  ;;  %482 = vmatmul.mubr.msk.bf16.vlgmr.msra.gmra.mrb[0].mxu1 %vm91_vm0, %v503_v7 }
   0xf   :  { %477 = vmatprep.mubr.msk.bf16.mxu0 %vm91_vm0, %v504_v8  ;;  %485 = vmatprep.mubr.msk.bf16.mxu1 %vm91_vm0, %v505_v9 }
  0x16   :  { %478 = vmatmul.mubr.msk.bf16.gmra.mrb[4].mxu0 %vm91_vm0, %v506_v10  ;;  %486 = vmatmul.mubr.msk.bf16.gmra.mrb[4].mxu1 %vm91_vm0, %v507_v11 }
  0xe1   :  { %v475_v19 = vpop.f32.mrb[0].mxu0  ;;  %v483_v20 = vpop.f32.mrb[0].mxu1 }
  0xe2   :  { %v224_v21 = vmul.f32 %v475_v19, %v221_v17  ;;  %v232_v22 = vmul.f32 %v483_v20, %v221_v17  ;;  %v154_v23 = vpop.f32.mrb[1].mxu0  ;;  %v186_v24 = vpop.f32.mrb[1].mxu1 }
  0xe3   :  { %v222_v25 = vmul.f32 %v221_v17, %v154_v23  ;;  %v230_v26 = vmul.f32 %v221_v17, %v186_v24  ;;  %v476_v27 = vpop.f32.mrb[2].mxu0  ;;  %v484_v28 = vpop.f32.mrb[2].mxu1 }
  0xe4   :  { %v244_v29 = vadd.f32 %v572_v18, %v224_v21  ;;  %v252_v30 = vadd.f32 %v572_v18, %v232_v22  ;;  %v225_v31 = vmul.f32 %v476_v27, %v221_v17  ;;  %v233_v32 = vmul.f32 %v484_v28, %v221_v17  ;;  %v157_v33 = vpop.f32.mrb[3].mxu0  ;;  %v189_v34 = vpop.f32.mrb[3].mxu1 }
  0xe5   :  { %v242_v35 = vadd.f32 %v572_v18, %v222_v25  ;;  %v250_v36 = vadd.f32 %v572_v18, %v230_v26  ;;  %v223_v37 = vmul.f32 %v221_v17, %v157_v33  ;;  %v231_v38 = vmul.f32 %v221_v17, %v189_v34 }
  0xe6   :  { %v245_v39 = vadd.f32 %v572_v18, %v225_v31  ;;  %v253_v40 = vadd.f32 %v572_v18, %v233_v32  ;;  %v260_v43 = vmax.f32 %v244_v29, 0.0  ;;  %v268_v44 = vmax.f32 %v252_v30, 0.0 }
  0xe7   :  { %v243_v41 = vadd.f32 %v572_v18, %v223_v37  ;;  %v251_v42 = vadd.f32 %v572_v18, %v231_v38  ;;  %v258_v47 = vmax.f32 %v242_v35, 0.0  ;;  %v266_v48 = vmax.f32 %v250_v36, 0.0 }
  0xe8   :  { %v261_v45 = vmax.f32 %v245_v39, 0.0  ;;  %v269_v46 = vmax.f32 %v253_v40, 0.0 }
  0xe9   :  { %v259_v49 = vmax.f32 %v243_v41, 0.0  ;;  %v267_v50 = vmax.f32 %v251_v42, 0.0  ;;  %v479_v51 = vpop.f32.mrb[4].mxu0  ;;  %v487_v52 = vpop.f32.mrb[4].mxu1 }
  0xea   :  { %v417_v53 = vpack.c.bf16 %v261_v45, %v260_v43  ;;  %v437_v54 = vpack.c.bf16 %v269_v46, %v268_v44  ;;  %v228_v55 = vmul.f32 %v479_v51, %v221_v17  ;;  %v236_v56 = vmul.f32 %v487_v52, %v221_v17  ;;  %v170_v57 = vpop.f32.mrb[5].mxu0  ;;  %v202_v58 = vpop.f32.mrb[5].mxu1 }
  0xeb   :  { %v412_v59 = vpack.c.bf16 %v259_v49, %v258_v47  ;;  %v432_v60 = vpack.c.bf16 %v267_v50, %v266_v48  ;;  %v226_v61 = vmul.f32 %v221_v17, %v170_v57  ;;  %v234_v62 = vmul.f32 %v221_v17, %v202_v58  ;;  %v480_v63 = vpop.f32.mrb[6].mxu0  ;;  %v488_v0 = vpop.f32.mrb[6].mxu1 }
  0xec   :  { %449 = vst [vmem:[%s617_s3 + $0x8] sm:$0xff] %v417_v53   ;;  %453 = vst [vmem:[%s617_s3 + $0x28] sm:$0xff] %v437_v54   ;;  %v248_v1 = vadd.f32 %v572_v18, %v228_v55  ;;  %v256_v2 = vadd.f32 %v572_v18, %v236_v56  ;;  %v229_v3 = vmul.f32 %v480_v63, %v221_v17  ;;  %v173_v5 = vpop.f32.mrb[7].mxu0  ;;  %v205_v6 = vpop.f32.mrb[7].mxu1 }
  0xed   :  { %v237_v4 = vmul.f32 %v488_v0, %v221_v17  ;;  %413 = vst [vmem:[%s617_s3] sm:$0xff] %v412_v59   ;;  %452 = vst [vmem:[%s617_s3 + $0x20] sm:$0xff] %v432_v60   ;;  %v246_v7 = vadd.f32 %v572_v18, %v226_v61  ;;  %v254_v8 = vadd.f32 %v572_v18, %v234_v62 }
  0xee   :  { %v227_v9 = vmul.f32 %v221_v17, %v173_v5  ;;  %v235_v10 = vmul.f32 %v221_v17, %v205_v6  ;;  %v249_v11 = vadd.f32 %v572_v18, %v229_v3  ;;  %v264_v15 = vmax.f32 %v248_v1, 0.0 }
  0xef   :  { %v257_v12 = vadd.f32 %v572_v18, %v237_v4  ;;  %v272_v16 = vmax.f32 %v256_v2, 0.0  ;;  %v262_v21 = vmax.f32 %v246_v7, 0.0  ;;  %v270_v22 = vmax.f32 %v254_v8, 0.0 }
  0xf0   :  { %v247_v13 = vadd.f32 %v572_v18, %v227_v9  ;;  %v255_v14 = vadd.f32 %v572_v18, %v235_v10  ;;  %v265_v19 = vmax.f32 %v249_v11, 0.0 }
  0xf1   :  { %v273_v20 = vmax.f32 %v257_v12, 0.0 }
  0xf2   :  { %v263_v23 = vmax.f32 %v247_v13, 0.0  ;;  %v271_v24 = vmax.f32 %v255_v14, 0.0  ;;  %v427_v25 = vpack.c.bf16 %v265_v19, %v264_v15 }
  0xf3   :  { %v447_v26 = vpack.c.bf16 %v273_v20, %v272_v16 }
  0xf4   :  { %v422_v27 = vpack.c.bf16 %v263_v23, %v262_v21  ;;  %v442_v17 = vpack.c.bf16 %v271_v24, %v270_v22  ;;  %451 = vst [vmem:[%s617_s3 + $0x18] sm:$0xff] %v427_v25  }
  0xf5   :  { %455 = vst [vmem:[%s617_s3 + $0x38] sm:$0xff] %v447_v26  }
  0xf6   :  { %450 = vst [vmem:[%s617_s3 + $0x10] sm:$0xff] %v422_v27   ;;  %454 = vst [vmem:[%s617_s3 + $0x30] sm:$0xff] %v442_v17  }

// kernel: basic_block_forward.3
= control target key start
LH: loop header
LB: loop body
LE: loop exit
PB: predicated region body
PF: predicated region fallthrough
CT: control target
= control target key end

     0   :  { %vm362_vm0 = vcmask 1041408   ;;  %vm113_vm1 = vcmask 588800   ;;  %vm337_vm2 = vcmask 31744   ;;  %vm138_vm3 = vcmask 1043456   ;;  %s840_s1 = inlined_call_operand.vmem [shape: bf16[72,128], index: 1, kind: input, shape index: {}]   ;;  %s841_s4 = inlined_call_operand.vmem [shape: bf16[4,128], index: 4, kind: input, shape index: {}]   ;;  %s842_s0 = inlined_call_operand.vmem [shape: bf16[128,72], index: 0, kind: input, shape index: {}]   ;;  %s843_s3 = inlined_call_operand.vmem [shape: bf16[128,4], index: 3, kind: input, shape index: {}]   ;;  %s844_s2 = inlined_call_operand.vmem [shape: f32[2,128], index: 2, kind: input, shape index: {}]   ;;  %s845_s5 = inlined_call_operand.vmem [shape: f32[128,128], index: 5, kind: output, shape index: {}]  }
   0x1   :  { %v620_v0 = vld [vmem:[%s840_s1] sm:$0xff]   ;;  %v621_v1 = vld [vmem:[%s840_s1 + $0x8] sm:$0xff]   ;;  %v622_v2 = vld [vmem:[%s840_s1 + $0x10] sm:$0xff]   ;;  %v240_v24 = vlaneseq }
   0x2   :  { %574 = vmatprep.subr.bf16.mxu0 %v620_v0  ;;  %v296_v3 = vld [vmem:[%s841_s4] sm:$0x3]  ;;  %v623_v6 = vld [vmem:[%s840_s1 + $0x18] sm:$0xff]   ;;  %v628_v8 = vld [vmem:[%s843_s3 + $0x8] sm:$0xff]  }
   0x3   :  { %575 = vmatpush3.bf16.msra.mxu0 %v620_v0  ;;  %619 = vmatprep.subr.msk.bf16.mxu1 %vm362_vm0, %v296_v3  ;;  %v364_v4 = vsel %vm362_vm0, %v296_v3, 0  ;;  %v625_v5 = vld [vmem:[%s842_s0] sm:$0xff]   ;;  %v631_v9 = vld [vmem:[%s843_s3 + $0x10] sm:$0xff]   ;;  %v632_v11 = vld [vmem:[%s843_s3 + $0x18] sm:$0xff]   ;;  %v241_v26 = vshrl.u32 %v240_v24, 7 }
   0x4   :  { %576 = vmatprep.subr.bf16.mxu0 %v621_v1  ;;  %601 = vmatpush3.bf16.msra.mxu1 %v364_v4  ;;  %v627_v7 = vld [vmem:[%s843_s3] sm:$0xff]   ;;  %v626_v14 = vld [vmem:[%s842_s0 + $0x8] sm:$0xff]   ;;  %v629_v15 = vld [vmem:[%s842_s0 + $0x10] sm:$0xff]  }
   0x5   :  { %584 = vmatprep.mubr.msk.bf16.mxu0 %vm113_vm1, %v625_v5  ;;  %602 = vmatprep.mubr.msk.bf16.mxu1 %vm337_vm2, %v627_v7  ;;  %v624_v10 = vld [vmem:[%s840_s1 + $0x20] ss:$0 sps:$4 sm:$0xff]   ;;  %v636_v16 = vld [vmem:[%s843_s3 + $0x28] sm:$0xff]   ;;  %v639_v17 = vld [vmem:[%s843_s3 + $0x30] sm:$0xff]   ;;  %v242_v30 = vsub.s32 0, %v241_v26  ;;  %v262_v32 = vsub.s32 1, %v241_v26 }
   0x6   :  { %v635_v12 = vld [vmem:[%s843_s3 + $0x20] sm:$0xff]   ;;  %v140_v13 = vsel %vm138_vm3, %v624_v10, 0  ;;  %v630_v18 = vld [vmem:[%s842_s0 + $0x18] sm:$0xff]   ;;  %v634_v21 = vld [vmem:[%s842_s0 + $0x28] sm:$0xff]  }
   0x7   :  { %577 = vmatpush3.bf16.msra.mxu0 %v621_v1  ;;  %603 = vmatmul.mubr.msk.bf16.vlgmr.msra.gmra.mrb[0].mxu1 %vm337_vm2, %v628_v8  ;;  %v633_v19 = vld [vmem:[%s842_s0 + $0x20] sm:$0xff]   ;;  %v640_v20 = vld [vmem:[%s843_s3 + $0x38] sm:$0xff]   ;;  %v637_v22 = vld [vmem:[%s842_s0 + $0x30] sm:$0xff]  }
   0x8   :  { %578 = vmatprep.subr.bf16.mxu0 %v622_v2  ;;  %606 = vmatprep.mubr.msk.bf16.mxu1 %vm337_vm2, %v631_v9  ;;  %v638_v23 = vld [vmem:[%s842_s0 + $0x38] sm:$0xff]   ;;  %v239_v31 = vld [vmem:[%s844_s2] sm:$0x3] }
   0x9   :  { %v756_v34 = vrot.slane %v239_v31, %v242_v30  ;;  %v758_v37 = vrot.slane %v239_v31, %v262_v32 }
   0xb   :  { %579 = vmatpush3.bf16.msra.mxu0 %v622_v2 }
   0xc   :  { %580 = vmatprep.subr.bf16.mxu0 %v623_v6 }
   0xf   :  { %581 = vmatpush3.bf16.msra.mxu0 %v623_v6  ;;  %607 = vmatmul.mubr.msk.bf16.gmra.mrb[4].mxu1 %vm337_vm2, %v632_v11 }
  0x10   :  { %618 = vmatprep.subr.msk.bf16.mxu0 %vm138_vm3, %v624_v10  ;;  %610 = vmatprep.mubr.msk.bf16.mxu1 %vm337_vm2, %v635_v12 }
  0x13   :  { %583 = vmatpush3.bf16.msra.mxu0 %v140_v13 }
  0x16   :  { %585 = vmatmul.mubr.msk.bf16.vlgmr.msra.gmra.mrb[0].mxu0 %vm113_vm1, %v626_v14 }
  0x17   :  { %588 = vmatprep.mubr.msk.bf16.mxu0 %vm113_vm1, %v629_v15  ;;  %611 = vmatmul.mubr.msk.bf16.gmra.mrb[8].mxu1 %vm337_vm2, %v636_v16 }
  0x18   :  { %614 = vmatprep.mubr.msk.bf16.mxu1 %vm337_vm2, %v639_v17 }
  0x1e   :  { %589 = vmatmul.mubr.msk.bf16.gmra.mrb[4].mxu0 %vm113_vm1, %v630_v18 }
  0x1f   :  { %592 = vmatprep.mubr.msk.bf16.mxu0 %vm113_vm1, %v633_v19  ;;  %615 = vmatmul.mubr.msk.bf16.gmra.mrb[12].mxu1 %vm337_vm2, %v640_v20 }
  0x26   :  { %593 = vmatmul.mubr.msk.bf16.gmra.mrb[8].mxu0 %vm113_vm1, %v634_v21 }
  0x27   :  { %596 = vmatprep.mubr.msk.bf16.mxu0 %vm113_vm1, %v637_v22 }
  0x2e   :  { %597 = vmatmul.mubr.msk.bf16.gmra.mrb[12].mxu0 %vm113_vm1, %v638_v23 }
  0xda   :  { %v604_v25 = vpop.f32.mrb[0].mxu1 }
  0xdb   :  { %v400_v27 = vpop.f32.mrb[1].mxu1 }
  0xdc   :  { %v605_v28 = vpop.f32.mrb[2].mxu1 }
  0xdd   :  { %v403_v29 = vpop.f32.mrb[3].mxu1 }
  0xe2   :  { %v608_v33 = vpop.f32.mrb[4].mxu1 }
  0xe3   :  { %v416_v35 = vpop.f32.mrb[5].mxu1 }
  0xe4   :  { %v609_v36 = vpop.f32.mrb[6].mxu1 }
  0xe5   :  { %v419_v38 = vpop.f32.mrb[7].mxu1 }
  0xe9   :  { %v586_v39 = vpop.f32.mrb[0].mxu0 }
  0xea   :  { %v246_v40 = vmul.f32 %v586_v39, %v756_v34  ;;  %v176_v41 = vpop.f32.mrb[1].mxu0  ;;  %v612_v49 = vpop.f32.mrb[8].mxu1 }
  0xeb   :  { %v244_v42 = vmul.f32 %v756_v34, %v176_v41  ;;  %v587_v43 = vpop.f32.mrb[2].mxu0  ;;  %v432_v52 = vpop.f32.mrb[9].mxu1 }
  0xec   :  { %v266_v44 = vadd.f32 %v758_v37, %v246_v40  ;;  %v247_v45 = vmul.f32 %v587_v43, %v756_v34  ;;  %v179_v46 = vpop.f32.mrb[3].mxu0  ;;  %v613_v55 = vpop.f32.mrb[10].mxu1 }
  0xed   :  { %v264_v47 = vadd.f32 %v758_v37, %v244_v42  ;;  %v245_v48 = vmul.f32 %v756_v34, %v179_v46  ;;  %v435_v58 = vpop.f32.mrb[11].mxu1 }
  0xee   :  { %v465_v50 = vadd.f32 %v604_v25, %v266_v44  ;;  %v267_v51 = vadd.f32 %v758_v37, %v247_v45 }
  0xef   :  { %v463_v53 = vadd.f32 %v400_v27, %v264_v47  ;;  %v265_v54 = vadd.f32 %v758_v37, %v245_v48 }
  0xf0   :  { %v481_v56 = vmax.f32 %v465_v50, 0.0  ;;  %v466_v57 = vadd.f32 %v605_v28, %v267_v51 }
  0xf1   :  { %v479_v59 = vmax.f32 %v463_v53, 0.0  ;;  %v464_v60 = vadd.f32 %v403_v29, %v265_v54  ;;  %v590_v61 = vpop.f32.mrb[4].mxu0 }
  0xf2   :  { %497 = vst [vmem:[%s845_s5 + $0x10] sm:$0xff] %v481_v56  ;;  %v482_v62 = vmax.f32 %v466_v57, 0.0  ;;  %v250_v63 = vmul.f32 %v590_v61, %v756_v34  ;;  %v192_v0 = vpop.f32.mrb[5].mxu0  ;;  %v616_v9 = vpop.f32.mrb[12].mxu1 }
  0xf3   :  { %495 = vst [vmem:[%s845_s5] sm:$0xff] %v479_v59  ;;  %v480_v1 = vmax.f32 %v464_v60, 0.0  ;;  %v248_v2 = vmul.f32 %v756_v34, %v192_v0  ;;  %v591_v3 = vpop.f32.mrb[6].mxu0  ;;  %v448_v12 = vpop.f32.mrb[13].mxu1 }
  0xf4   :  { %498 = vst [vmem:[%s845_s5 + $0x18] sm:$0xff] %v482_v62  ;;  %v270_v4 = vadd.f32 %v758_v37, %v250_v63  ;;  %v251_v5 = vmul.f32 %v591_v3, %v756_v34  ;;  %v195_v6 = vpop.f32.mrb[7].mxu0  ;;  %v617_v15 = vpop.f32.mrb[14].mxu1 }
  0xf5   :  { %496 = vst [vmem:[%s845_s5 + $0x8] sm:$0xff] %v480_v1  ;;  %v268_v7 = vadd.f32 %v758_v37, %v248_v2  ;;  %v249_v8 = vmul.f32 %v756_v34, %v195_v6  ;;  %v451_v18 = vpop.f32.mrb[15].mxu1 }
  0xf6   :  { %v469_v10 = vadd.f32 %v608_v33, %v270_v4  ;;  %v271_v11 = vadd.f32 %v758_v37, %v251_v5 }
  0xf7   :  { %v467_v13 = vadd.f32 %v416_v35, %v268_v7  ;;  %v269_v14 = vadd.f32 %v758_v37, %v249_v8 }
  0xf8   :  { %v485_v16 = vmax.f32 %v469_v10, 0.0  ;;  %v470_v17 = vadd.f32 %v609_v36, %v271_v11 }
  0xf9   :  { %v483_v19 = vmax.f32 %v467_v13, 0.0  ;;  %v468_v20 = vadd.f32 %v419_v38, %v269_v14  ;;  %v594_v21 = vpop.f32.mrb[8].mxu0 }
  0xfa   :  { %501 = vst [vmem:[%s845_s5 + $0x30] sm:$0xff] %v485_v16  ;;  %v486_v22 = vmax.f32 %v470_v17, 0.0  ;;  %v254_v23 = vmul.f32 %v594_v21, %v756_v34  ;;  %v208_v24 = vpop.f32.mrb[9].mxu0 }
  0xfb   :  { %499 = vst [vmem:[%s845_s5 + $0x20] sm:$0xff] %v483_v19  ;;  %v484_v25 = vmax.f32 %v468_v20, 0.0  ;;  %v252_v26 = vmul.f32 %v756_v34, %v208_v24  ;;  %v595_v27 = vpop.f32.mrb[10].mxu0 }
  0xfc   :  { %502 = vst [vmem:[%s845_s5 + $0x38] sm:$0xff] %v486_v22  ;;  %v274_v28 = vadd.f32 %v758_v37, %v254_v23  ;;  %v255_v29 = vmul.f32 %v595_v27, %v756_v34  ;;  %v211_v30 = vpop.f32.mrb[11].mxu0 }
  0xfd   :  { %500 = vst [vmem:[%s845_s5 + $0x28] sm:$0xff] %v484_v25  ;;  %v272_v31 = vadd.f32 %v758_v37, %v252_v26  ;;  %v253_v32 = vmul.f32 %v756_v34, %v211_v30 }
  0xfe   :  { %v473_v33 = vadd.f32 %v612_v49, %v274_v28  ;;  %v275_v35 = vadd.f32 %v758_v37, %v255_v29 }
  0xff   :  { %v471_v36 = vadd.f32 %v432_v52, %v272_v31  ;;  %v273_v38 = vadd.f32 %v758_v37, %v253_v32 }
 0x100   :  { %v489_v39 = vmax.f32 %v473_v33, 0.0  ;;  %v474_v40 = vadd.f32 %v613_v55, %v275_v35 }
 0x101   :  { %v487_v41 = vmax.f32 %v471_v36, 0.0  ;;  %v472_v42 = vadd.f32 %v435_v58, %v273_v38  ;;  %v598_v43 = vpop.f32.mrb[12].mxu0 }
 0x102   :  { %505 = vst [vmem:[%s845_s5 + $0x50] sm:$0xff] %v489_v39  ;;  %v490_v44 = vmax.f32 %v474_v40, 0.0  ;;  %v258_v45 = vmul.f32 %v598_v43, %v756_v34  ;;  %v224_v46 = vpop.f32.mrb[13].mxu0 }
 0x103   :  { %503 = vst [vmem:[%s845_s5 + $0x40] sm:$0xff] %v487_v41  ;;  %v488_v47 = vmax.f32 %v472_v42, 0.0  ;;  %v256_v48 = vmul.f32 %v756_v34, %v224_v46  ;;  %v599_v49 = vpop.f32.mrb[14].mxu0 }
 0x104   :  { %506 = vst [vmem:[%s845_s5 + $0x58] sm:$0xff] %v490_v44  ;;  %v278_v50 = vadd.f32 %v758_v37, %v258_v45  ;;  %v259_v51 = vmul.f32 %v599_v49, %v756_v34  ;;  %v227_v52 = vpop.f32.mrb[15].mxu0 }
 0x105   :  { %504 = vst [vmem:[%s845_s5 + $0x48] sm:$0xff] %v488_v47  ;;  %v276_v53 = vadd.f32 %v758_v37, %v256_v48  ;;  %v257_v54 = vmul.f32 %v756_v34, %v227_v52 }
 0x106   :  { %v477_v55 = vadd.f32 %v616_v9, %v278_v50  ;;  %v279_v56 = vadd.f32 %v758_v37, %v259_v51 }
 0x107   :  { %v475_v57 = vadd.f32 %v448_v12, %v276_v53  ;;  %v277_v58 = vadd.f32 %v758_v37, %v257_v54 }
 0x108   :  { %v493_v59 = vmax.f32 %v477_v55, 0.0  ;;  %v478_v60 = vadd.f32 %v617_v15, %v279_v56 }
 0x109   :  { %v491_v61 = vmax.f32 %v475_v57, 0.0  ;;  %v476_v62 = vadd.f32 %v451_v18, %v277_v58 }
 0x10a   :  { %509 = vst [vmem:[%s845_s5 + $0x70] sm:$0xff] %v493_v59  ;;  %v494_v63 = vmax.f32 %v478_v60, 0.0 }
 0x10b   :  { %507 = vst [vmem:[%s845_s5 + $0x60] sm:$0xff] %v491_v61  ;;  %v492_v34 = vmax.f32 %v476_v62, 0.0 }
 0x10c   :  { %510 = vst [vmem:[%s845_s5 + $0x78] sm:$0xff] %v494_v63 }
 0x10d   :  { %508 = vst [vmem:[%s845_s5 + $0x68] sm:$0xff] %v492_v34 }

</bundles_post_ra>
